<compile_context>
chip_gen: v5e
topology: v5e:2x2
jax: 0.10.0
libtpu: 0.0.40
codegen_flags: <defaults>
</compile_context>

<pallas_src>
import functools
import math

import jax
import jax.numpy as jnp
from jax.experimental import pallas as pl
from jax.experimental.pallas import tpu as pltpu


# ------------------------------- kernel bodies --------------------------------

def _gelu_exact_f32(x):
    # nn.GELU() default = exact erf formulation, kept in f32.
    return 0.5 * x * (1.0 + jax.lax.erf(x * (1.0 / math.sqrt(2.0))))


def _mlp_kernel_resident(x_ref, w1_ref, b1_ref, w2_ref, b2_ref, out_ref,
                         acc_ref, *, th):
    # Weights are full-size, VMEM-resident (constant index_map); slice the
    # current hidden tile in-VMEM.
    # x_ref  : (tm, E)  f32    row tile (constant across hidden axis)
    # w1_ref : (E, H)   bf16   fc1 weight, (in, out) layout, resident
    # b1_ref : (1, H)   f32    fc1 bias, resident
    # w2_ref : (H, E)   bf16   fc2 weight, (in, out) layout, resident
    # b2_ref : (1, E)   f32    fc2 bias
    # acc_ref: (tm, E)  f32    VMEM accumulator over hidden tiles
    j = pl.program_id(1)

    @pl.when(j == 0)
    def _():
        # fold the fc2 bias into the accumulator init
        acc_ref[...] = jnp.broadcast_to(b2_ref[...], acc_ref.shape)

    col = pl.multiple_of(j * th, th)          # lane-aligned hidden offset
    w1 = w1_ref[:, pl.ds(col, th)]
    b1 = b1_ref[:, pl.ds(col, th)]
    w2 = w2_ref[pl.ds(col, th), :]

    x_bf = x_ref[...].astype(jnp.bfloat16)    # in-kernel cast (no host pass)
    h = jnp.dot(x_bf, w1, preferred_element_type=jnp.float32) + b1
    h = _gelu_exact_f32(h)
    acc_ref[...] += jnp.dot(h.astype(jnp.bfloat16), w2,
                            preferred_element_type=jnp.float32)

    @pl.when(j == pl.num_programs(1) - 1)
    def _():
        out_ref[...] = acc_ref[...].astype(out_ref.dtype)


def _mlp_kernel_stream(x_ref, w1_ref, b1_ref, w2_ref, b2_ref, out_ref, acc_ref):
    # Streaming fallback: weight tiles change with the hidden index j.
    # w1_ref : (E, th) bf16,  b1_ref : (1, th) f32,  w2_ref : (th, E) bf16
    j = pl.program_id(1)

    @pl.when(j == 0)
    def _():
        acc_ref[...] = jnp.broadcast_to(b2_ref[...], acc_ref.shape)

    x_bf = x_ref[...].astype(jnp.bfloat16)
    h = jnp.dot(x_bf, w1_ref[...],
                preferred_element_type=jnp.float32) + b1_ref[...]
    h = _gelu_exact_f32(h)
    acc_ref[...] += jnp.dot(h.astype(jnp.bfloat16), w2_ref[...],
                            preferred_element_type=jnp.float32)

    @pl.when(j == pl.num_programs(1) - 1)
    def _():
        out_ref[...] = acc_ref[...].astype(out_ref.dtype)


# --------------------------------- wrapper -------------------------------------

def _round_up(n, m):
    return ((n + m - 1) // m) * m


def _pick_th(H, th_max):
    """Largest lane-aligned (multiple of 128) divisor of H that is <= th_max."""
    if H <= th_max:
        return H
    cand = (th_max // 128) * 128
    while cand >= 128:
        if H % cand == 0:
            return cand
        cand -= 128
    # No lane-aligned divisor (only tiny / odd H); single hidden step is safe.
    return H


def mlp_forward(x, w1_io, b1, w2_io, b2, *, tm_max=512, th_max=1024,
                resident_budget_bytes=40 * 1024 * 1024):
    """Fused MLP forward.

    x      : (..., E)  float32 activations
    w1_io  : (E, 4E)   bf16   fc1 weight, pre-transposed to (in, out)
    b1     : (1, 4E)   f32
    w2_io  : (4E, E)   bf16   fc2 weight, pre-transposed to (in, out)
    b2     : (1, E)    f32
    returns (..., E) in x.dtype
    """
    E = x.shape[-1]
    H = w1_io.shape[1]
    assert w1_io.shape == (E, H) and w2_io.shape == (H, E)
    assert b1.shape == (1, H) and b2.shape == (1, E)

    lead = x.shape[:-1]
    M = int(math.prod(lead)) if lead else 1
    x2 = x.reshape(M, E)

    # --- row tiling: multiples of 8 sublanes, pad M if needed ---
    tm = tm_max if M >= tm_max else _round_up(M, 8)
    M_pad = _round_up(M, tm)
    if M_pad != M:
        x2 = jnp.pad(x2, ((0, M_pad - M), (0, 0)))

    # --- hidden (reduction) tiling: lane-aligned divisor of H ---
    th = _pick_th(H, th_max)
    grid = (M_pad // tm, H // th)

    # --- VMEM footprint estimate (bytes) ---
    f32, bf16 = 4, 2
    itemsize = jnp.dtype(x.dtype).itemsize
    act_bytes = 2 * tm * E * itemsize            # double-buffered x tile
    out_bytes = 2 * tm * E * itemsize            # double-buffered out tile
    acc_bytes = tm * E * f32                     # accumulator scratch
    mid_bytes = 4 * tm * th * f32                # intermediate + slack
    resident_w = 2 * 2 * E * H * bf16 + 2 * H * f32 + 2 * E * f32
    stream_w = 2 * 2 * E * th * bf16 + 2 * th * f32 + 2 * E * f32

    resident_total = resident_w + act_bytes + out_bytes + acc_bytes + mid_bytes
    resident = resident_total <= resident_budget_bytes

    if resident:
        kernel = functools.partial(_mlp_kernel_resident, th=th)
        w1_spec = pl.BlockSpec((E, H), lambda i, j: (0, 0))   # DMA'd once
        b1_spec = pl.BlockSpec((1, H), lambda i, j: (0, 0))
        w2_spec = pl.BlockSpec((H, E), lambda i, j: (0, 0))
        vmem_need = resident_total
    else:
        kernel = _mlp_kernel_stream
        w1_spec = pl.BlockSpec((E, th), lambda i, j: (0, j))
        b1_spec = pl.BlockSpec((1, th), lambda i, j: (0, j))
        w2_spec = pl.BlockSpec((th, E), lambda i, j: (j, 0))
        vmem_need = stream_w + act_bytes + out_bytes + acc_bytes + mid_bytes

    vmem_limit = int(min(max(2 * vmem_need, 16 * 1024 * 1024),
                         64 * 1024 * 1024))

    out = pl.pallas_call(
        kernel,
        out_shape=jax.ShapeDtypeStruct((M_pad, E), x.dtype),
        grid_spec=pltpu.PrefetchScalarGridSpec(
            num_scalar_prefetch=0,
            grid=grid,
            in_specs=[
                pl.BlockSpec((tm, E), lambda i, j: (i, 0)),   # x row tile
                w1_spec,                                       # fc1 weight
                b1_spec,                                       # fc1 bias
                w2_spec,                                       # fc2 weight
                pl.BlockSpec((1, E), lambda i, j: (0, 0)),    # fc2 bias
            ],
            out_specs=pl.BlockSpec((tm, E), lambda i, j: (i, 0)),
            scratch_shapes=[pltpu.VMEM((tm, E), jnp.float32)],
        ),
        compiler_params=pltpu.CompilerParams(
            dimension_semantics=("parallel", "arbitrary"),
            vmem_limit_bytes=vmem_limit),
    )(x2, w1_io, b1, w2_io, b2)

    if M_pad != M:
        out = out[:M]
    return out.reshape(*lead, E)


# ----------------------------- parameter helpers -------------------------------

def init_mlp_params(key, n_embd):
    """torch-layout params: fc1 (4E, E), fc2 (E, 4E) with xavier_uniform on fc2."""
    E, H = n_embd, 4 * n_embd
    k1, k2, k3, k4 = jax.random.split(key, 4)
    fc1_w = 0.02 * jax.random.normal(k1, (H, E), jnp.float32)
    fc1_b = 0.02 * jax.random.normal(k2, (H,), jnp.float32)
    a = math.sqrt(6.0 / (H + E))                       # xavier_uniform_ on fc2
    fc2_w = jax.random.uniform(k3, (E, H), jnp.float32, -a, a)
    fc2_b = 0.02 * jax.random.normal(k4, (E,), jnp.float32)
    return fc1_w, fc1_b, fc2_w, fc2_b


def prepare_mlp_weights(fc1_w, fc1_b, fc2_w, fc2_b):
    """Pre-transpose once to (in, out) layout, cast weights to bf16."""
    w1_io = jnp.asarray(fc1_w).T.astype(jnp.bfloat16)      # (E, 4E)
    w2_io = jnp.asarray(fc2_w).T.astype(jnp.bfloat16)      # (4E, E)
    b1 = jnp.asarray(fc1_b, jnp.float32).reshape(1, -1)    # (1, 4E)
    b2 = jnp.asarray(fc2_b, jnp.float32).reshape(1, -1)    # (1, E)
    return w1_io, b1, w2_io, b2


# ----------------------------------- demo ---------------------------------------

if __name__ == "__main__":
    B, T, E = 2, 8, 32          # small shapes consistent with the module
    key = jax.random.PRNGKey(0)
    k_p, k_x = jax.random.split(key)

    fc1_w, fc1_b, fc2_w, fc2_b = init_mlp_params(k_p, E)
    w1_io, b1, w2_io, b2 = prepare_mlp_weights(fc1_w, fc1_b, fc2_w, fc2_b)

    x = jax.random.normal(k_x, (B, T, E), jnp.float32)

    out = mlp_forward(x, w1_io, b1, w2_io, b2)
    out = jax.block_until_ready(out)

    # pure-JAX reference with identical bf16 operand casts (dropout = identity)
    xf = x.astype(jnp.bfloat16).astype(jnp.float32)
    h_ref = xf @ w1_io.astype(jnp.float32) + b1
    h_ref = 0.5 * h_ref * (1.0 + jax.lax.erf(h_ref / math.sqrt(2.0)))
    ref = (h_ref.astype(jnp.bfloat16).astype(jnp.float32)
           @ w2_io.astype(jnp.float32) + b2)

    assert out.shape == (B, T, E)
    assert bool(jnp.all(jnp.isfinite(out)))
    assert bool(jnp.allclose(out, ref, rtol=1e-2, atol=2e-3)), "mismatch vs reference"
    print("KERNEL_OK")
</pallas_src>

<mosaic_0001>
module attributes {stable_mosaic.version = 11 : i64} {
  func.func @_mlp_kernel_resident(%arg0: i32, %arg1: i32, %arg2: memref<16x32xf32, #tpu.memory_space<vmem>>, %arg3: memref<32x128xbf16, #tpu.memory_space<vmem>>, %arg4: memref<1x128xf32, #tpu.memory_space<vmem>>, %arg5: memref<128x32xbf16, #tpu.memory_space<vmem>>, %arg6: memref<1x32xf32, #tpu.memory_space<vmem>>, %arg7: memref<16x32xf32, #tpu.memory_space<vmem>>, %arg8: memref<16x32xf32, #tpu.memory_space<vmem>>) attributes {dimension_semantics = [#tpu.dimension_semantics<parallel>, #tpu.dimension_semantics<arbitrary>], iteration_bounds = array<i64: 1, 1>, scalar_prefetch = 0 : i64, scratch_operands = 1 : i64, tpu.core_type = #tpu.core_type<tc>, window_params = [{transform_indices = @transform_0, window_bounds = array<i64: 16, 32>}, {pipeline_mode = #tpu.pipeline_mode<synchronous>, transform_indices = @transform_1, window_bounds = array<i64: 32, 128>}, {pipeline_mode = #tpu.pipeline_mode<synchronous>, transform_indices = @transform_2, window_bounds = array<i64: 1, 128>}, {pipeline_mode = #tpu.pipeline_mode<synchronous>, transform_indices = @transform_3, window_bounds = array<i64: 128, 32>}, {pipeline_mode = #tpu.pipeline_mode<synchronous>, transform_indices = @transform_4, window_bounds = array<i64: 1, 32>}, {transform_indices = @transform_5, window_bounds = array<i64: 16, 32>}]} {
    %c0_i32 = arith.constant 0 : i32
    %0 = arith.cmpi eq, %arg1, %c0_i32 : i32
    %1 = arith.extui %0 : i1 to i32
    %c0_i32_0 = arith.constant 0 : i32
    %2 = arith.cmpi ne, %1, %c0_i32_0 : i32
    scf.if %2 {
      %c0_15 = arith.constant 0 : index
      %c0_16 = arith.constant 0 : index
      %32 = vector.load %arg6[%c0_15, %c0_16] : memref<1x32xf32, #tpu.memory_space<vmem>>, vector<1x32xf32>
      %33 = vector.shape_cast %32 : vector<1x32xf32> to vector<1x32xf32>
      %34 = vector.broadcast %33 : vector<1x32xf32> to vector<16x32xf32>
      %c0_17 = arith.constant 0 : index
      %c0_18 = arith.constant 0 : index
      %35 = vector.load %arg8[%c0_17, %c0_18] : memref<16x32xf32, #tpu.memory_space<vmem>>, vector<16x32xf32>
      tpu.vector_store %arg8[%c0_17, %c0_18], %34 {strides = array<i32>} : memref<16x32xf32, #tpu.memory_space<vmem>>, vector<16x32xf32>,
    } else {
    }
    %c128_i32 = arith.constant 128 : i32
    %3 = arith.muli %arg1, %c128_i32 : i32
    %4 = tpu.assume_multiple %3, 128 : i32
    %c0 = arith.constant 0 : index
    %5 = arith.index_cast %4 : i32 to index
    %6 = vector.load %arg3[%c0, %5] : memref<32x128xbf16, #tpu.memory_space<vmem>>, vector<32x128xbf16>
    %c0_1 = arith.constant 0 : index
    %7 = arith.index_cast %4 : i32 to index
    %8 = vector.load %arg4[%c0_1, %7] : memref<1x128xf32, #tpu.memory_space<vmem>>, vector<1x128xf32>
    %9 = arith.index_cast %4 : i32 to index
    %c0_2 = arith.constant 0 : index
    %10 = vector.load %arg5[%9, %c0_2] : memref<128x32xbf16, #tpu.memory_space<vmem>>, vector<128x32xbf16>
    %c0_3 = arith.constant 0 : index
    %c0_4 = arith.constant 0 : index
    %11 = vector.load %arg2[%c0_3, %c0_4] : memref<16x32xf32, #tpu.memory_space<vmem>>, vector<16x32xf32>
    %12 = arith.truncf %11 : vector<16x32xf32> to vector<16x32xbf16>
    %cst = arith.constant dense<0.000000e+00> : vector<16x128xf32>
    %13 = tpu.matmul %12, %6, %cst {dimension_numbers = #tpu.dot_dimension_numbers<[1], [0], [0], [1], [0, 0, 1, 1], [], []>} : vector<16x32xbf16>, vector<32x128xbf16>, vector<16x128xf32> -> vector<16x128xf32>
    %14 = vector.broadcast %8 : vector<1x128xf32> to vector<16x128xf32>
    %15 = arith.addf %13, %14 : vector<16x128xf32>
    %cst_5 = arith.constant 5.000000e-01 : f32
    %16 = vector.broadcast %cst_5 : f32 to vector<16x128xf32>
    %17 = arith.mulf %16, %15 : vector<16x128xf32>
    %cst_6 = arith.constant 0.707106769 : f32
    %18 = vector.broadcast %cst_6 : f32 to vector<16x128xf32>
    %19 = arith.mulf %15, %18 : vector<16x128xf32>
    %20 = math.erf %19 : vector<16x128xf32>
    %cst_7 = arith.constant 1.000000e+00 : f32
    %21 = vector.broadcast %cst_7 : f32 to vector<16x128xf32>
    %22 = arith.addf %21, %20 : vector<16x128xf32>
    %23 = arith.mulf %17, %22 : vector<16x128xf32>
    %c0_8 = arith.constant 0 : index
    %c0_9 = arith.constant 0 : index
    %24 = vector.load %arg8[%c0_8, %c0_9] : memref<16x32xf32, #tpu.memory_space<vmem>>, vector<16x32xf32>
    %25 = arith.truncf %23 : vector<16x128xf32> to vector<16x128xbf16>
    %cst_10 = arith.constant dense<0.000000e+00> : vector<16x32xf32>
    %26 = tpu.matmul %25, %10, %cst_10 {dimension_numbers = #tpu.dot_dimension_numbers<[1], [0], [0], [1], [0, 0, 1, 1], [], []>} : vector<16x128xbf16>, vector<128x32xbf16>, vector<16x32xf32> -> vector<16x32xf32>
    %27 = arith.addf %24, %26 : vector<16x32xf32>
    %c0_11 = arith.constant 0 : index
    %c0_12 = arith.constant 0 : index
    %28 = vector.load %arg8[%c0_11, %c0_12] : memref<16x32xf32, #tpu.memory_space<vmem>>, vector<16x32xf32>
    tpu.vector_store %arg8[%c0_11, %c0_12], %27 {strides = array<i32>} : memref<16x32xf32, #tpu.memory_space<vmem>>, vector<16x32xf32>,
    %c0_i32_13 = arith.constant 0 : i32
    %29 = arith.cmpi eq, %arg1, %c0_i32_13 : i32
    %30 = arith.extui %29 : i1 to i32
    %c0_i32_14 = arith.constant 0 : i32
    %31 = arith.cmpi ne, %30, %c0_i32_14 : i32
    scf.if %31 {
      %c0_15 = arith.constant 0 : index
      %c0_16 = arith.constant 0 : index
      %32 = vector.load %arg8[%c0_15, %c0_16] : memref<16x32xf32, #tpu.memory_space<vmem>>, vector<16x32xf32>
      %c0_17 = arith.constant 0 : index
      %c0_18 = arith.constant 0 : index
      %33 = vector.load %arg7[%c0_17, %c0_18] : memref<16x32xf32, #tpu.memory_space<vmem>>, vector<16x32xf32>
      tpu.vector_store %arg7[%c0_17, %c0_18], %32 {strides = array<i32>} : memref<16x32xf32, #tpu.memory_space<vmem>>, vector<16x32xf32>,
    } else {
    }
    return
  }
  func.func @transform_0(%arg0: i32, %arg1: i32) -> (i32, i32) {
    %c0_i32 = arith.constant 0 : i32
    %c0_i32_0 = arith.constant 0 : i32
    return %arg0, %c0_i32 : i32, i32
  }
  func.func @transform_1(%arg0: i32, %arg1: i32) -> (i32, i32) {
    %c0_i32 = arith.constant 0 : i32
    %c0_i32_0 = arith.constant 0 : i32
    %c0_i32_1 = arith.constant 0 : i32
    return %c0_i32, %c0_i32_0 : i32, i32
  }
  func.func @transform_2(%arg0: i32, %arg1: i32) -> (i32, i32) {
    %c0_i32 = arith.constant 0 : i32
    %c0_i32_0 = arith.constant 0 : i32
    %c0_i32_1 = arith.constant 0 : i32
    return %c0_i32, %c0_i32_0 : i32, i32
  }
  func.func @transform_3(%arg0: i32, %arg1: i32) -> (i32, i32) {
    %c0_i32 = arith.constant 0 : i32
    %c0_i32_0 = arith.constant 0 : i32
    %c0_i32_1 = arith.constant 0 : i32
    return %c0_i32, %c0_i32_0 : i32, i32
  }
  func.func @transform_4(%arg0: i32, %arg1: i32) -> (i32, i32) {
    %c0_i32 = arith.constant 0 : i32
    %c0_i32_0 = arith.constant 0 : i32
    %c0_i32_1 = arith.constant 0 : i32
    return %c0_i32, %c0_i32_0 : i32, i32
  }
  func.func @transform_5(%arg0: i32, %arg1: i32) -> (i32, i32) {
    %c0_i32 = arith.constant 0 : i32
    %c0_i32_0 = arith.constant 0 : i32
    return %arg0, %c0_i32 : i32, i32
  }
}

</mosaic_0001>

<bundles_post_ra>
// kernel: tpu_custom_call.1
= control target key start
LH: loop header
LB: loop body
LE: loop exit
PB: predicated region body
PF: predicated region fallthrough
CT: control target
= control target key end

     0   :  { %s478_s0 = inlined_call_operand.vmem [shape: f32[16,32], index: 0, kind: input, shape index: {}]   ;;  %s479_s1 = inlined_call_operand.vmem [shape: bf16[32,128], index: 1, kind: input, shape index: {}]   ;;  %s480_s2 = inlined_call_operand.vmem [shape: f32[1,128], index: 2, kind: input, shape index: {}]   ;;  %s481_s3 = inlined_call_operand.vmem [shape: bf16[128,32], index: 3, kind: input, shape index: {}]   ;;  %s482_s4 = inlined_call_operand.vmem [shape: f32[1,32], index: 4, kind: input, shape index: {}]   ;;  %s483_s5 = inlined_call_operand.hbm [shape: f32[16,32], index: 5, kind: output, shape index: {}]  }
   0x1   :  { %v331_v0 = vld [vmem:[%s479_s1 + $0x8] sm:$0xff]  ;;  %v330_v1 = vld [vmem:[%s479_s1] sm:$0xff] }
   0x2   :  { %v64_v2 = vld [vmem:[%s478_s0] sm:$0xff]  ;;  %92 = vmatpush.bf16.msra.mxu0 %v331_v0  ;;  %v65_v3 = vld [vmem:[%s478_s0 + $0x8] sm:$0xff] }
   0x3   :  { %10 = vsyncpa [#allocation4], 0  ;;  %v66_v4 = vpack.c.bf16 %v65_v3, %v64_v2  ;;  %vm30_vm0 = vcmask 261120   ;;  %v343_v5 = vld [vmem:[%s480_s2] ss:$0 sm:$0xff]  ;;  %v339_v6 = vld [vmem:[%s481_s3 + $0x38] sm:$0xff] }
   0x4   :  { %239 = vmatpush.bf16.msra.mxu1 %v339_v6  ;;  %v338_v10 = vld [vmem:[%s481_s3 + $0x30] sm:$0xff]  ;;  %v337_v12 = vld [vmem:[%s481_s3 + $0x28] sm:$0xff]  ;;  %v336_v17 = vld [vmem:[%s481_s3 + $0x20] sm:$0xff]  ;;  %s270_s20 = sshll.u32 %s483_s5, 4  ;;  %s376_s21 = smov 128   ;;  %s271_s20 = int_to_ptr.hbm [resolvable:$true] %s270_s20 }
   0x5   :  { %v335_v23 = vld [vmem:[%s481_s3 + $0x18] sm:$0xff]  ;;  %v334_v29 = vld [vmem:[%s481_s3 + $0x10] sm:$0xff]  ;;  %v333_v37 = vld [vmem:[%s481_s3 + $0x8] sm:$0xff]  ;;  %s377_s22 = smov 8  }
   0x6   :  { %93 = vmatpush.bf16.msra.mxu0 %v330_v1  ;;  %v332_v44 = vld [vmem:[%s481_s3] sm:$0xff]  ;;  %s375_s3 = smov [#allocation3]  }
   0x7   :  { %v344_v55 = vld [vmem:[%s482_s4] ss:$0 sm:$0xff]  ;;  %s268_s4 = sshll.u32 %s375_s3, 4  ;;  %s269_s4 = int_to_ptr.vmem [resolvable:$true] %s268_s4 }
   0x8   :  { %240 = vmatpush.bf16.msra.mxu1 %v338_v10  ;;  %31 = vst.msk [vmem:[#allocation2] sm:$0xff] %vm30_vm0, %v344_v55 }
   0x9   :  { %295 = vmatmul.msk.bf16.vlgmr.msra.gmra.mxu0 %vm30_vm0, %v66_v4  ;;  %32 = vst.msk [vmem:[#allocation2 + $0x8] sm:$0xff] %vm30_vm0, %v344_v55 }
   0xc   :  { %241 = vmatpush.bf16.msra.mxu1 %v337_v12 }
  0x10   :  { %242 = vmatpush.bf16.msra.mxu1 %v336_v17 }
  0x14   :  { %243 = vmatpush.bf16.msra.mxu1 %v335_v23 }
  0x18   :  { %244 = vmatpush.bf16.msra.mxu1 %v334_v29 }
  0x1c   :  { %245 = vmatpush.bf16.msra.mxu1 %v333_v37  ;;  %v188_v37 = vld [vmem:[#allocation2] sm:$0xff] }
  0x20   :  { %246 = vmatpush.bf16.msra.mxu1 %v332_v44 }
  0x86   :  { %v95_v7 = vpop.f32.mrf.mxu0 }
  0x87   :  { %v427_v8 = vadd.f32 %v343_v5, %v95_v7 }
  0x89   :  { %v430_v9 = vmul.f32 0.70710677, %v427_v8 }
  0x8b   :  { %v104_v11 = vmul.f32 %v430_v9, %v430_v9 }
  0x8d   :  { %v105_v13 = vmin.f32 %v104_v11, 16.0 }
  0x8e   :  { %v97_v14 = vpop.f32.mrf.mxu0 }
  0x8f   :  { %v106_v15 = vmul.f32 2.1237322e-06, %v105_v13  ;;  %v440_v16 = vadd.f32 %v343_v5, %v97_v14  ;;  %v117_v18 = vmul.f32 3.8918573e-05, %v105_v13 }
  0x91   :  { %v107_v19 = vadd.f32 0.00028619796, %v106_v15  ;;  %v446_v20 = vmul.f32 0.70710677, %v440_v16  ;;  %v118_v21 = vadd.f32 0.001143296, %v117_v18 }
  0x93   :  { %v144_v22 = vmul.f32 %v446_v20, %v446_v20  ;;  %v108_v24 = vmul.f32 %v107_v19, %v105_v13  ;;  %v119_v25 = vmul.f32 %v118_v21, %v105_v13 }
  0x95   :  { %v145_v26 = vmin.f32 %v144_v22, 16.0  ;;  %v120_v27 = vadd.f32 0.014752088, %v119_v25  ;;  %v109_v31 = vadd.f32 0.0036580483, %v108_v24 }
  0x97   :  { %v146_v28 = vmul.f32 2.1237322e-06, %v145_v26  ;;  %v157_v30 = vmul.f32 3.8918573e-05, %v145_v26  ;;  %v121_v32 = vmul.f32 %v120_v27, %v105_v13  ;;  %v110_v39 = vmul.f32 %v109_v31, %v105_v13 }
  0x98   :  { %v100_v31 = vmul.f32 0.5, %v427_v8 }
  0x99   :  { %v147_v33 = vadd.f32 0.00028619796, %v146_v28  ;;  %v158_v34 = vadd.f32 0.001143296, %v157_v30  ;;  %v122_v35 = vadd.f32 0.112945676, %v121_v32 }
  0x9a   :  { %v111_v46 = vadd.f32 0.05243302, %v110_v39  ;;  %v101_v32 = vmul.f32 0.5, %v440_v16 }
  0x9b   :  { %v148_v36 = vmul.f32 %v147_v33, %v145_v26  ;;  %v159_v38 = vmul.f32 %v158_v34, %v145_v26  ;;  %v123_v40 = vmul.f32 %v122_v35, %v105_v13 }
  0x9c   :  { %v112_v52 = vmul.f32 %v111_v46, %v105_v13 }
  0x9d   :  { %v149_v41 = vadd.f32 0.0036580483, %v148_v36  ;;  %v160_v42 = vadd.f32 0.014752088, %v159_v38  ;;  %v124_v43 = vadd.f32 0.4994258, %v123_v40 }
  0x9e   :  { %v113_v57 = vadd.f32 0.18741608, %v112_v52 }
  0x9f   :  { %v161_v45 = vmul.f32 %v160_v42, %v145_v26  ;;  %v125_v47 = vmul.f32 %v124_v43, %v105_v13  ;;  %v150_v48 = vmul.f32 %v149_v41, %v145_v26 }
  0xa0   :  { %v114_v62 = vmul.f32 %v113_v57, %v105_v13 }
  0xa1   :  { %v162_v49 = vadd.f32 0.112945676, %v161_v45  ;;  %v126_v50 = vadd.f32 1.0, %v125_v47  ;;  %v151_v53 = vadd.f32 0.05243302, %v150_v48 }
  0xa2   :  { %v115_v4 = vadd.f32 1.1283791, %v114_v62 }
  0xa3   :  { %v163_v51 = vmul.f32 %v162_v49, %v145_v26  ;;  %345 = vrcp.f32 %v126_v50  ;;  %v152_v58 = vmul.f32 %v151_v53, %v145_v26  ;;  %v138_v1 = vand.u32 2147483648, %v126_v50 }
  0xa4   :  { %v136_v3 = vand.u32 2147483647, %v126_v50  ;;  %vm132_vm2 = vweird.f32 %v126_v50  ;;  %v116_v14 = vmul.f32 %v115_v4, %v430_v9 }
  0xa5   :  { %v164_v54 = vadd.f32 0.4994258, %v163_v51  ;;  %v153_v63 = vadd.f32 0.18741608, %v152_v58  ;;  %v139_v10 = vor.u32 1.1754944e-38, %v138_v1 }
  0xa6   :  { %vm137_vm4 = vcmp.eq.f32.partialorder %v136_v3, 8.507059e+37 }
  0xa7   :  { %v165_v56 = vmul.f32 %v164_v54, %v145_v26  ;;  %v154_v6 = vmul.f32 %v153_v63, %v145_v26 }
  0xa9   :  { %v166_v59 = vadd.f32 1.0, %v165_v56  ;;  %v346_v60 = vpop.eup %345  ;;  %v155_v17 = vadd.f32 1.1283791, %v154_v6 }
  0xaa   :  { %v128_v61 = vmul.f32 %v346_v60, %v126_v50  ;;  %vm133_vm1 = vweird.f32 %v346_v60 }
  0xab   :  { %347 = vrcp.f32 %v166_v59  ;;  %vm134_vm3 = vmor %vm132_vm2, %vm133_vm1  ;;  %v178_v18 = vand.u32 2147483648, %v166_v59  ;;  %v176_v22 = vand.u32 2147483647, %v166_v59  ;;  %vm172_vm6 = vweird.f32 %v166_v59 }
  0xac   :  { %v129_v0 = vsub.f32 1.0, %v128_v61  ;;  %v156_v25 = vmul.f32 %v155_v17, %v446_v20  ;;  %v189_v20 = vld [vmem:[#allocation2 + $0x8] sm:$0xff] }
  0xad   :  { %v179_v24 = vor.u32 1.1754944e-38, %v178_v18  ;;  %vm177_vm8 = vcmp.eq.f32.partialorder %v176_v22, 8.507059e+37 }
  0xae   :  { %v130_v2 = vmul.f32 %v346_v60, %v129_v0 }
  0xb0   :  { %v131_v7 = vadd.f32 %v346_v60, %v130_v2 }
  0xb1   :  { %v348_v5 = vpop.eup %347 }
  0xb2   :  { %v168_v11 = vmul.f32 %v348_v5, %v166_v59  ;;  %v135_v12 = vsel %vm134_vm3, %v346_v60, %v131_v7  ;;  %vm173_vm5 = vweird.f32 %v348_v5 }
  0xb3   :  { %v140_v15 = vsel %vm137_vm4, %v139_v10, %v135_v12  ;;  %vm174_vm7 = vmor %vm172_vm6, %vm173_vm5 }
  0xb4   :  { %v169_v13 = vsub.f32 1.0, %v168_v11  ;;  %v141_v19 = vmul.f32 %v140_v15, %v116_v14 }
  0xb6   :  { %v170_v21 = vmul.f32 %v348_v5, %v169_v13  ;;  %v296_v26 = vclamps-f32 %v141_v19, 1.0 }
  0xb8   :  { %v171_v23 = vadd.f32 %v348_v5, %v170_v21  ;;  %v184_v30 = vadd.f32 1.0, %v296_v26 }
  0xba   :  { %v175_v27 = vsel %vm174_vm7, %v348_v5, %v171_v23  ;;  %v186_v34 = vmul.f32 %v184_v30, %v100_v31 }
  0xbb   :  { %v180_v28 = vsel %vm177_vm8, %v179_v24, %v175_v27 }
  0xbc   :  { %v181_v29 = vmul.f32 %v180_v28, %v156_v25 }
  0xbe   :  { %v297_v9 = vclamps-f32 %v181_v29, 1.0 }
  0xc0   :  { %v185_v33 = vadd.f32 1.0, %v297_v9 }
  0xc2   :  { %v187_v35 = vmul.f32 %v185_v33, %v101_v32 }
  0xc4   :  { %v190_v36 = vpack.c.bf16 %v187_v35, %v186_v34 }
  0xc6   :  { %247 = vmatmul.bf16.vlgmr.msra.gmra.mxu1 %v190_v36 }
 0x143   :  { %v248_v38 = vpop.f32.mrf.mxu1 }
 0x144   :  { %v253_v39 = vadd.f32 %v248_v38, %v188_v37 }
 0x146   :  { %255 = vst.msk [vmem:[#allocation2] sm:$0xff] %vm30_vm0, %v253_v39 }
 0x14b   :  { %v250_v40 = vpop.f32.mrf.mxu1 }
 0x14c   :  { %v254_v41 = vadd.f32 %v250_v40, %v189_v20 }
 0x14d   :  { %v260_v42 = vld [vmem:[#allocation2] sm:$0xff] }
 0x14e   :  { %256 = vst.msk [vmem:[#allocation2 + $0x8] sm:$0xff] %vm30_vm0, %v254_v41 }
 0x14f   :  { %262 = vst.msk [vmem:[#allocation3] sm:$0xff] %vm30_vm0, %v260_v42 }
 0x155   :  { %v261_v8 = vld [vmem:[#allocation2 + $0x8] sm:$0xff] }
 0x156   :  { %263 = vst.msk [vmem:[#allocation3 + $0x8] sm:$0xff] %vm30_vm0, %v261_v8 }
 0x157   :  { %276 = dma.vmem_to_hbm [thread:$0]  %s269_s4, 256, %s271_s20, [#allocation4], %s376_s21, %s376_s21, %s377_s22  }
 0x158   :  { %373 = dma.done.wait [#allocation4], 256  }
 0x159   :  { %374 = vsyncadd [#allocation4], 4294967040 }
 0x15a   :  { %281 = vsyncpa [#allocation4], 1 }

</bundles_post_ra>
